<compile_context>
chip_gen: v5e
topology: v5e:2x2
jax: 0.10.0
libtpu: 0.0.40
codegen_flags: <defaults>
</compile_context>

<pallas_src>
import jax
import jax.numpy as jnp
from jax.experimental import pallas as pl
from jax.experimental.pallas import tpu as pltpu


def _round_up(x, m):
    return ((x + m - 1) // m) * m


def _choose_tb(B, *, max_tb=512, target_steps=8):
    """Batch tile: single small tile for tiny batches, otherwise a 128-multiple tile
    sized so the grid has >= target_steps steps (capped by max_tb)."""
    if B <= 128:
        return _round_up(B, 8)
    tb = _round_up(pl.cdiv(B, target_steps), 128)
    return max(128, min(tb, max_tb))


# ---------------------------------------------------------------------------
# Pallas kernel: fused 3-layer MLP forward on one batch tile.
#   xu_ref:(TB, Ds+Da) -> out_ref:(TB, 1)
# Matmul operands are cast to the weight dtype (bf16 fast path); accumulation and
# all bias/ReLU math stay f32.
# ---------------------------------------------------------------------------
def _qvalue_kernel(xu_ref, w1_ref, b1_ref, w2_ref, b2_ref, w3_ref, b3_ref, out_ref):
    f32 = jnp.float32
    wdt = w1_ref.dtype                      # matmul operand dtype (bf16 or f32)

    # ---- layer 1: single fused dot over the concatenated features ----
    h = jnp.dot(xu_ref[...].astype(wdt), w1_ref[...], preferred_element_type=f32)
    h = jnp.maximum(h + b1_ref[...], 0.0)   # f32 bias + ReLU

    # ---- layer 2 ----
    h = jnp.dot(h.astype(wdt), w2_ref[...], preferred_element_type=f32)
    h = jnp.maximum(h + b2_ref[...], 0.0)

    # ---- layer 3: (TB,H) @ (H,1) -> (TB,1); no transpose of h ----
    q = jnp.dot(h.astype(wdt), w3_ref[...], preferred_element_type=f32)
    out_ref[...] = (q + b3_ref[0]).astype(out_ref.dtype)   # b3 is an SMEM scalar


# ---------------------------------------------------------------------------
# Wrapper: batch-tiled 1-D grid, VMEM-resident weights, SMEM scalar bias.
# ---------------------------------------------------------------------------
def qvalue_forward(state, action, params, *, max_block_b=512, target_steps=8):
    """Pallas QValue forward. state: [B, Ds], action: [B, Da] -> q: [B] (squeezed)."""
    w1, b1, w2, b2, w3, b3 = params
    B = state.shape[0]
    F, H = w1.shape
    assert state.shape[1] + action.shape[1] == F

    # Concat once in the wrapper (B x F x 4 bytes of HBM traffic is negligible and
    # it halves layer-1 MXU work / removes one input DMA stream).
    xu = jnp.concatenate([state, action], axis=-1)

    tb = _choose_tb(B, max_tb=max_block_b, target_steps=target_steps)
    bp = _round_up(B, tb)
    if bp != B:
        xu = jnp.pad(xu, ((0, bp - B), (0, 0)))

    resident = lambda shape: pl.BlockSpec(shape, lambda i: (0, 0))  # VMEM-resident

    out = pl.pallas_call(
        _qvalue_kernel,
        out_shape=jax.ShapeDtypeStruct((bp, 1), jnp.float32),
        grid=(bp // tb,),
        in_specs=[
            pl.BlockSpec((tb, F), lambda i: (i, 0)),            # xu tile
            resident((F, H)),                                   # W1 (bf16/f32)
            resident((1, H)),                                   # b1 (f32)
            resident((H, H)),                                   # W2
            resident((1, H)),                                   # b2 (f32)
            resident((H, 1)),                                   # W3
            pl.BlockSpec(memory_space=pltpu.MemorySpace.SMEM),  # b3 scalar (f32, (1,))
        ],
        out_specs=pl.BlockSpec((tb, 1), lambda i: (i, 0)),
        compiler_params=pltpu.CompilerParams(
            dimension_semantics=("parallel",),   # batch axis shardable over v7x's 2 TCs
        ),
    )(xu, w1, b1, w2, b2, w3, b3)

    # torch .squeeze(): drop the size-1 value dim (and the batch dim if B == 1).
    return jnp.squeeze(out[:B])


# ---------------------------------------------------------------------------
# Deterministic parameter construction (make_mlp(params, 1) analogue).
# Weights are [in_features, out_features]; pass dtype=jnp.bfloat16 for the MXU fast
# path at production sizes.  Biases always stay f32 (elementwise math is f32).
# ---------------------------------------------------------------------------
def make_qvalue_params(state_dim, action_dim, hidden_dim, key, dtype=jnp.float32):
    k1, k2, k3, k4, k5 = jax.random.split(key, 5)
    F = state_dim + action_dim
    s1 = 0.5
    s2 = 0.5 / (hidden_dim ** 0.5)
    w1 = s1 * jax.random.normal(k1, (F, hidden_dim), jnp.float32)
    w2 = s2 * jax.random.normal(k2, (hidden_dim, hidden_dim), jnp.float32)
    w3 = s2 * jax.random.normal(k3, (hidden_dim, 1), jnp.float32)
    b1 = 0.1 * jax.random.normal(k4, (1, hidden_dim), jnp.float32)
    b2 = 0.1 * jax.random.normal(k5, (1, hidden_dim), jnp.float32)
    b3 = jnp.full((1,), 0.05, jnp.float32)
    return (w1.astype(dtype), b1, w2.astype(dtype), b2, w3.astype(dtype), b3)


def qvalue_reference(state, action, params):
    """Pure-JAX f32 reference matching the PyTorch module (concat -> MLP -> squeeze)."""
    w1, b1, w2, b2, w3, b3 = params
    f32 = jnp.float32
    xu = jnp.concatenate([state, action], axis=-1).astype(f32)
    h = jnp.maximum(xu @ w1.astype(f32) + b1, 0.0)
    h = jnp.maximum(h @ w2.astype(f32) + b2, 0.0)
    return jnp.squeeze(h @ w3.astype(f32) + b3)


if __name__ == "__main__":
    key = jax.random.PRNGKey(0)
    k_s, k_a, k_p, k_s2, k_a2 = jax.random.split(key, 5)

    # Small demo shapes consistent with the module.
    batch, state_dim, action_dim, hidden = 8, 12, 4, 32
    state = jax.random.normal(k_s, (batch, state_dim), jnp.float32)
    action = jax.random.normal(k_a, (batch, action_dim), jnp.float32)

    # --- f32 weights: tight check against the pure-JAX reference (single tile) ---
    params_f32 = make_qvalue_params(state_dim, action_dim, hidden, k_p, dtype=jnp.float32)
    q = jax.block_until_ready(qvalue_forward(state, action, params_f32))
    q_ref = jax.block_until_ready(qvalue_reference(state, action, params_f32))
    assert q.shape == (batch,), q.shape
    assert jnp.allclose(q, q_ref, atol=2e-4, rtol=2e-4), (q, q_ref)

    # --- bf16 weights (production fast path): multi-block grid, batch padding,
    #     bf16 MXU operands with f32 accumulation -> looser tolerance is expected.
    params_bf16 = make_qvalue_params(state_dim, action_dim, hidden, k_p, dtype=jnp.bfloat16)
    batch2 = 300
    state2 = jax.random.normal(k_s2, (batch2, state_dim), jnp.float32)
    action2 = jax.random.normal(k_a2, (batch2, action_dim), jnp.float32)
    q2 = jax.block_until_ready(qvalue_forward(state2, action2, params_bf16))
    q2_ref = jax.block_until_ready(qvalue_reference(state2, action2, params_bf16))
    assert q2.shape == (batch2,), q2.shape
    assert jnp.allclose(q2, q2_ref, atol=5e-2, rtol=5e-2), (
        float(jnp.max(jnp.abs(q2 - q2_ref))), q2[:8], q2_ref[:8])

    print("KERNEL_OK")
</pallas_src>

<mosaic_0001>
module attributes {stable_mosaic.version = 11 : i64} {
  func.func @_qvalue_kernel(%arg0: i32, %arg1: memref<8x16xf32, #tpu.memory_space<vmem>>, %arg2: memref<16x32xf32, #tpu.memory_space<vmem>>, %arg3: memref<1x32xf32, #tpu.memory_space<vmem>>, %arg4: memref<32x32xf32, #tpu.memory_space<vmem>>, %arg5: memref<1x32xf32, #tpu.memory_space<vmem>>, %arg6: memref<32x1xf32, #tpu.memory_space<vmem>>, %arg7: memref<1xf32, #tpu.memory_space<smem>>, %arg8: memref<8x1xf32, #tpu.memory_space<vmem>>) attributes {dimension_semantics = [#tpu.dimension_semantics<parallel>], iteration_bounds = array<i64: 1>, scalar_prefetch = 0 : i64, scratch_operands = 0 : i64, tpu.core_type = #tpu.core_type<tc>, window_params = [{transform_indices = @transform_0, window_bounds = array<i64: 8, 16>}, {pipeline_mode = #tpu.pipeline_mode<synchronous>, transform_indices = @transform_1, window_bounds = array<i64: 16, 32>}, {pipeline_mode = #tpu.pipeline_mode<synchronous>, transform_indices = @transform_2, window_bounds = array<i64: 1, 32>}, {pipeline_mode = #tpu.pipeline_mode<synchronous>, transform_indices = @transform_3, window_bounds = array<i64: 32, 32>}, {pipeline_mode = #tpu.pipeline_mode<synchronous>, transform_indices = @transform_4, window_bounds = array<i64: 1, 32>}, {pipeline_mode = #tpu.pipeline_mode<synchronous>, transform_indices = @transform_5, window_bounds = array<i64: 32, 1>}, {transform_indices = @transform_6, window_bounds = array<i64: 1>}, {transform_indices = @transform_7, window_bounds = array<i64: 8, 1>}]} {
    %c0 = arith.constant 0 : index
    %c0_0 = arith.constant 0 : index
    %0 = vector.load %arg1[%c0, %c0_0] : memref<8x16xf32, #tpu.memory_space<vmem>>, vector<8x16xf32>
    %c0_1 = arith.constant 0 : index
    %c0_2 = arith.constant 0 : index
    %1 = vector.load %arg2[%c0_1, %c0_2] : memref<16x32xf32, #tpu.memory_space<vmem>>, vector<16x32xf32>
    %cst = arith.constant dense<0.000000e+00> : vector<8x32xf32>
    %2 = tpu.matmul %0, %1, %cst {dimension_numbers = #tpu.dot_dimension_numbers<[1], [0], [0], [1], [0, 0, 1, 1], [], []>} : vector<8x16xf32>, vector<16x32xf32>, vector<8x32xf32> -> vector<8x32xf32>
    %c0_3 = arith.constant 0 : index
    %c0_4 = arith.constant 0 : index
    %3 = vector.load %arg3[%c0_3, %c0_4] : memref<1x32xf32, #tpu.memory_space<vmem>>, vector<1x32xf32>
    %4 = vector.broadcast %3 : vector<1x32xf32> to vector<8x32xf32>
    %5 = arith.addf %2, %4 : vector<8x32xf32>
    %cst_5 = arith.constant 0.000000e+00 : f32
    %6 = vector.broadcast %cst_5 : f32 to vector<8x32xf32>
    %7 = arith.maximumf %5, %6 : vector<8x32xf32>
    %c0_6 = arith.constant 0 : index
    %c0_7 = arith.constant 0 : index
    %8 = vector.load %arg4[%c0_6, %c0_7] : memref<32x32xf32, #tpu.memory_space<vmem>>, vector<32x32xf32>
    %cst_8 = arith.constant dense<0.000000e+00> : vector<8x32xf32>
    %9 = tpu.matmul %7, %8, %cst_8 {dimension_numbers = #tpu.dot_dimension_numbers<[1], [0], [0], [1], [0, 0, 1, 1], [], []>} : vector<8x32xf32>, vector<32x32xf32>, vector<8x32xf32> -> vector<8x32xf32>
    %c0_9 = arith.constant 0 : index
    %c0_10 = arith.constant 0 : index
    %10 = vector.load %arg5[%c0_9, %c0_10] : memref<1x32xf32, #tpu.memory_space<vmem>>, vector<1x32xf32>
    %11 = vector.broadcast %10 : vector<1x32xf32> to vector<8x32xf32>
    %12 = arith.addf %9, %11 : vector<8x32xf32>
    %cst_11 = arith.constant 0.000000e+00 : f32
    %13 = vector.broadcast %cst_11 : f32 to vector<8x32xf32>
    %14 = arith.maximumf %12, %13 : vector<8x32xf32>
    %c0_12 = arith.constant 0 : index
    %c0_13 = arith.constant 0 : index
    %15 = vector.load %arg6[%c0_12, %c0_13] : memref<32x1xf32, #tpu.memory_space<vmem>>, vector<32x1xf32>
    %cst_14 = arith.constant dense<0.000000e+00> : vector<8x1xf32>
    %16 = tpu.matmul %14, %15, %cst_14 {dimension_numbers = #tpu.dot_dimension_numbers<[1], [0], [0], [1], [0, 0, 1, 1], [], []>} : vector<8x32xf32>, vector<32x1xf32>, vector<8x1xf32> -> vector<8x1xf32>
    %c0_15 = arith.constant 0 : index
    %17 = memref.load %arg7[%c0_15] : memref<1xf32, #tpu.memory_space<smem>>
    %18 = vector.broadcast %17 : f32 to vector<8x1xf32>
    %19 = arith.addf %16, %18 : vector<8x1xf32>
    %c0_16 = arith.constant 0 : index
    %c0_17 = arith.constant 0 : index
    %20 = vector.load %arg8[%c0_16, %c0_17] : memref<8x1xf32, #tpu.memory_space<vmem>>, vector<8x1xf32>
    tpu.vector_store %arg8[%c0_16, %c0_17], %19 {strides = array<i32>} : memref<8x1xf32, #tpu.memory_space<vmem>>, vector<8x1xf32>,
    return
  }
  func.func @transform_0(%arg0: i32) -> (i32, i32) {
    %c0_i32 = arith.constant 0 : i32
    %c0_i32_0 = arith.constant 0 : i32
    return %arg0, %c0_i32 : i32, i32
  }
  func.func @transform_1(%arg0: i32) -> (i32, i32) {
    %c0_i32 = arith.constant 0 : i32
    %c0_i32_0 = arith.constant 0 : i32
    %c0_i32_1 = arith.constant 0 : i32
    return %c0_i32, %c0_i32_0 : i32, i32
  }
  func.func @transform_2(%arg0: i32) -> (i32, i32) {
    %c0_i32 = arith.constant 0 : i32
    %c0_i32_0 = arith.constant 0 : i32
    %c0_i32_1 = arith.constant 0 : i32
    return %c0_i32, %c0_i32_0 : i32, i32
  }
  func.func @transform_3(%arg0: i32) -> (i32, i32) {
    %c0_i32 = arith.constant 0 : i32
    %c0_i32_0 = arith.constant 0 : i32
    %c0_i32_1 = arith.constant 0 : i32
    return %c0_i32, %c0_i32_0 : i32, i32
  }
  func.func @transform_4(%arg0: i32) -> (i32, i32) {
    %c0_i32 = arith.constant 0 : i32
    %c0_i32_0 = arith.constant 0 : i32
    %c0_i32_1 = arith.constant 0 : i32
    return %c0_i32, %c0_i32_0 : i32, i32
  }
  func.func @transform_5(%arg0: i32) -> (i32, i32) {
    %c0_i32 = arith.constant 0 : i32
    %c0_i32_0 = arith.constant 0 : i32
    %c0_i32_1 = arith.constant 0 : i32
    return %c0_i32, %c0_i32_0 : i32, i32
  }
  func.func @transform_6(%arg0: i32) -> i32 {
    %c0_i32 = arith.constant 0 : i32
    %c0_i32_0 = arith.constant 0 : i32
    return %c0_i32 : i32
  }
  func.func @transform_7(%arg0: i32) -> (i32, i32) {
    %c0_i32 = arith.constant 0 : i32
    %c0_i32_0 = arith.constant 0 : i32
    return %arg0, %c0_i32 : i32, i32
  }
}

</mosaic_0001>

<bundles_post_ra>
// kernel: tpu_custom_call.1
= control target key start
LH: loop header
LB: loop body
LE: loop exit
PB: predicated region body
PF: predicated region fallthrough
CT: control target
= control target key end

     0   :  { %13 = vsyncpa [#allocation4], 0  ;;  %s306_s0 = inlined_call_operand.hbm [shape: f32[8,16], index: 0, kind: input, shape index: {}]   ;;  %s307_s1 = inlined_call_operand.hbm [shape: f32[16,32], index: 1, kind: input, shape index: {}]   ;;  %s308_s2 = inlined_call_operand.vmem [shape: f32[1,32], index: 2, kind: input, shape index: {}]   ;;  %s309_s3 = inlined_call_operand.vmem [shape: f32[32,32], index: 3, kind: input, shape index: {}]   ;;  %s310_s4 = inlined_call_operand.vmem [shape: f32[1,32], index: 4, kind: input, shape index: {}]   ;;  %s311_s5 = inlined_call_operand.vmem [shape: f32[32,1], index: 5, kind: input, shape index: {}]   ;;  %s312_s6 = inlined_call_operand.<no memory space> [shape: f32[1], index: 6, kind: input, shape index: {}]   ;;  %s313_s7 = inlined_call_operand.vmem [shape: f32[8,1], index: 7, kind: output, shape index: {}]  }
   0x1   :  { %s20_s26 = sshll.u32 %s306_s0, 4  ;;  %s21_s26 = int_to_ptr.hbm [resolvable:$true] %s20_s26 }
   0x2   :  { %14 = vsyncpa [#allocation6], 0  ;;  %s220_s27 = smov [#allocation3]   ;;  %s30_s8 = sshll.u32 %s307_s1, 4  ;;  %s31_s8 = int_to_ptr.hbm [resolvable:$true] %s30_s8 }
   0x3   :  { %s22_s28 = sshll.u32 %s220_s27, 4  ;;  %s221_s9 = smov [#allocation5]   ;;  %s23_s28 = int_to_ptr.vmem [resolvable:$true] %s22_s28 }
   0x4   :  { %25 = dma.hbm_to_vmem [thread:$0]  %s21_s26, 128, %s23_s28, [#allocation4]  }
   0x5   :  { %s32_s10 = sshll.u32 %s221_s9, 4  ;;  %s222_s11 = smov 128   ;;  %s33_s10 = int_to_ptr.vmem [resolvable:$true] %s32_s10 }
   0x6   :  { %s223_s12 = smov 8  }
   0x7   :  { %38 = dma.hbm_to_vmem [thread:$0]  %s31_s8, 256, %s33_s10, [#allocation6], %s222_s11, %s222_s11, %s223_s12  }
   0x8   :  { %216 = dma.done.wait [#allocation4], 128  }
   0x9   :  { %217 = vsyncadd [#allocation4], 4294967168 }
   0xa   :  { %218 = dma.done.wait [#allocation6], 256  }
   0xb   :  { %219 = vsyncadd [#allocation6], 4294967040  ;;  %v59_v0 = vld [vmem:[#allocation5 + $0x8] sm:$0xff]  ;;  %v58_v1 = vld [vmem:[#allocation5] sm:$0xff]  ;;  %vm64_vm0 = vcmask 130048   ;;  %vm97_vm1 = vcmask 261120   ;;  %v127_v19 = vstv %s312_s6 }
   0xc   :  { %82 = vmatpush.msra.mxu0 %v59_v0  ;;  %v57_v2 = vld [vmem:[#allocation3] sm:$0xff]  ;;  %v92_v3 = vld [vmem:[%s309_s3 + $0x18] sm:$0xff]  ;;  %v91_v4 = vld [vmem:[%s309_s3 + $0x10] sm:$0xff]  ;;  %vm151_vm2 = vcmask 7168  }
   0xd   :  { %113 = vmatpush.msra.mxu1 %v92_v3  ;;  %v90_v5 = vld [vmem:[%s309_s3 + $0x8] sm:$0xff]  ;;  %v89_v6 = vld [vmem:[%s309_s3] sm:$0xff]  ;;  %v125_v7 = vld [vmem:[%s311_s5 + $0x18] sm:$0xff] }
   0xe   :  { %83 = vmatpush.msra.mxu0 %v58_v1  ;;  %143 = vmatpush.msra.mxu2 %v125_v7  ;;  %v166_v8 = vld [vmem:[%s308_s2] ss:$0 sm:$0xff]  ;;  %v124_v12 = vld [vmem:[%s311_s5 + $0x10] sm:$0xff]  ;;  %v123_v13 = vld [vmem:[%s311_s5 + $0x8] sm:$0xff] }
   0xf   :  { %159 = vmatmul.msk.f32.vlgmr.msra.gmra.mxu0 %vm64_vm0, %v57_v2  ;;  %114 = vmatpush.msra.mxu1 %v91_v4  ;;  %v122_v14 = vld [vmem:[%s311_s5] sm:$0xff] }
  0x10   :  { %144 = vmatpush.msra.mxu2 %v124_v12  ;;  %v167_v15 = vld [vmem:[%s310_s4] ss:$0 sm:$0xff] }
  0x11   :  { %115 = vmatpush.msra.mxu1 %v90_v5 }
  0x12   :  { %145 = vmatpush.msra.mxu2 %v123_v13 }
  0x13   :  { %116 = vmatpush.msra.mxu1 %v89_v6 }
  0x14   :  { %146 = vmatpush.msra.mxu2 %v122_v14 }
  0x8c   :  { %v85_v9 = vpop.f32.mrf.mxu0 }
  0x8d   :  { %v86_v10 = vadd.f32 %v166_v8, %v85_v9 }
  0x8f   :  { %v88_v11 = vmax.f32 %v86_v10, 0.0 }
  0x91   :  { %160 = vmatmul.msk.f32.vlgmr.msra.gmra.mxu1 %vm97_vm1, %v88_v11 }
 0x10e   :  { %v118_v16 = vpop.f32.mrf.mxu1 }
 0x10f   :  { %v119_v17 = vadd.f32 %v167_v15, %v118_v16 }
 0x111   :  { %v121_v18 = vmax.f32 %v119_v17, 0.0 }
 0x113   :  { %161 = vmatmul.msk.f32.vlgmr.msra.gmra.mxu2 %vm97_vm1, %v121_v18 }
 0x196   :  { %v148_v20 = vpop.f32.mrf.mxu2 }
 0x197   :  { %v149_v21 = vadd.f32 %v148_v20, %v127_v19 }
 0x199   :  { %152 = vst.msk [vmem:[%s313_s7] sm:$0xff] %vm151_vm2, %v149_v21 }
 0x19a   :  { %157 = vsyncpa [#allocation4], 1 }
 0x19b   :  { %158 = vsyncpa [#allocation6], 1 }

</bundles_post_ra>
